<compile_context>
chip_gen: v6e
topology: v6e:2x2x1
jax: 0.10.0
libtpu: 0.0.40
codegen_flags: <defaults>
</compile_context>

<pallas_src>
import functools

import jax
import jax.numpy as jnp
from jax.experimental import pallas as pl
from jax.experimental.pallas import tpu as pltpu

BN_EPS = 1e-5


def _round_up(x, m):
    return (x + m - 1) // m * m


def _tpu_vmem_bytes():
    try:
        return int(getattr(pltpu.get_tpu_info(), "vmem_capacity_bytes",
                           64 * 1024 * 1024))
    except Exception:  # pragma: no cover - conservative fallback
        return 64 * 1024 * 1024


# ----------------------------------------------------------------------------
# Fused ASPP kernel: 4 conv branches + concat + 1x1 projection + BN + ReLU
# ----------------------------------------------------------------------------
def _aspp_fused_kernel(x_hbm, w1_hbm, wd_hbm, wp_hbm, z5_ref, bb_ref, o_ref,
                       xwin, w1b, wdb, wpb, sem,
                       *, dils, P, PL, th, W, C, pack_taps):
    n = pl.program_id(0)
    i = pl.program_id(1)
    n_h = pl.num_programs(1)
    slot = i % 2
    rows = th * W
    win_h = th + 2 * P

    def window_copy(blk, s):
        # rows [blk*th, blk*th + win_h) of sample n -> interior columns
        # [PL, PL+W) of halo-window slot s (sublane-aligned destination).
        return pltpu.make_async_copy(
            x_hbm.at[n, pl.ds(blk * th, win_h)],
            xwin.at[s, :, pl.ds(PL, W), :],
            sem.at[s])

    @pl.when(i == 0)
    def _prime():
        # W-halo columns are never written by any DMA: zero them once per sample.
        for s in range(2):
            xwin[s, :, 0:PL, :] = jnp.zeros((win_h, PL, C), xwin.dtype)
            xwin[s, :, PL + W:, :] = jnp.zeros((win_h, P, C), xwin.dtype)
        window_copy(0, 0).start()
        # Grid-invariant weights: single-buffered VMEM copy (no pipeline
        # double-buffering).  Reloaded per sample so the scheme stays correct
        # if the parallel batch axis is split across TensorCores.
        pltpu.make_async_copy(w1_hbm, w1b, sem.at[2]).start()
        pltpu.make_async_copy(wd_hbm, wdb, sem.at[3]).start()
        pltpu.make_async_copy(wp_hbm, wpb, sem.at[4]).start()
        pltpu.make_async_copy(w1_hbm, w1b, sem.at[2]).wait()
        pltpu.make_async_copy(wd_hbm, wdb, sem.at[3]).wait()
        pltpu.make_async_copy(wp_hbm, wpb, sem.at[4]).wait()

    # Wait for this tile's halo window; prefetch the next tile (double buffer).
    window_copy(i, slot).wait()

    @pl.when(i + 1 < n_h)
    def _prefetch():
        window_copy(i + 1, 1 - slot).start()

    cdt = w1b.dtype
    bb = bb_ref[...]                                   # (1, 256) f32 folded BN bias

    def patch(oy, ox):                                 # (th, W, C), static offsets
        return xwin[slot, pl.ds(oy, th), pl.ds(ox, W), :]

    # Branch 1: 1x1 conv (+ folded BN) + ReLU, then its projection block.
    y = jnp.dot(patch(P, PL).reshape(rows, C), w1b[...],
                preferred_element_type=jnp.float32)
    y = jnp.maximum(y + bb, 0.0)
    acc = jnp.dot(y.astype(cdt), wpb[0], preferred_element_type=jnp.float32)

    # Branches 2-4: dilated 3x3 convs as shifted-window matmuls.
    for b, d in enumerate(dils[1:]):
        offs = [(P + (ky - 1) * d, PL + (kx - 1) * d)
                for ky in range(3) for kx in range(3)]
        if pack_taps:
            # Small Cin: pack the 9 taps along channels -> one K=9*C matmul.
            lhs = jnp.concatenate([patch(oy, ox) for oy, ox in offs], axis=-1)
            yb = jnp.dot(lhs.reshape(rows, 9 * C), wdb[b],
                         preferred_element_type=jnp.float32)
        else:
            # Large Cin: 9 K=C matmuls, accumulator starts from the first dot.
            yb = jnp.dot(patch(*offs[0]).reshape(rows, C), wdb[b * 9],
                         preferred_element_type=jnp.float32)
            for t in range(1, 9):
                yb = yb + jnp.dot(patch(*offs[t]).reshape(rows, C),
                                  wdb[b * 9 + t],
                                  preferred_element_type=jnp.float32)
        yb = jnp.maximum(yb + bb, 0.0)
        acc = acc + jnp.dot(yb.astype(cdt), wpb[b + 1],
                            preferred_element_type=jnp.float32)

    # Pooled branch (already projected, includes projection-BN bias), final ReLU.
    acc = acc + z5_ref[n]
    o_ref[0] = jnp.maximum(acc, 0.0)


def aspp_fused(x_padh, w1, wdil, wproj4, z5tot, bias_b,
               *, dils, P, H, W, C, th, pack_taps, vmem_limit):
    N = x_padh.shape[0]
    n_h = H // th
    rows = th * W
    PL = _round_up(P, 8)          # sublane-aligned left W-halo inside the VMEM window
    kernel = functools.partial(_aspp_fused_kernel, dils=tuple(dils), P=P, PL=PL,
                               th=th, W=W, C=C, pack_taps=pack_taps)
    return pl.pallas_call(
        kernel,
        out_shape=jax.ShapeDtypeStruct((N, H * W, 256), jnp.float32),
        grid=(N, n_h),
        in_specs=[
            pl.BlockSpec(memory_space=pl.ANY),                  # input (manual halo DMA)
            pl.BlockSpec(memory_space=pl.ANY),                  # w 1x1
            pl.BlockSpec(memory_space=pl.ANY),                  # w dilated (packed/per-tap)
            pl.BlockSpec(memory_space=pl.ANY),                  # w proj, branches 1-4
            pl.BlockSpec((N, 1, 256), lambda n, i: (0, 0, 0)),  # pooled-branch addend
            pl.BlockSpec((1, 256), lambda n, i: (0, 0)),        # folded branch-BN bias
        ],
        out_specs=pl.BlockSpec((1, rows, 256), lambda n, i: (n, i, 0)),
        scratch_shapes=[
            pltpu.VMEM((2, th + 2 * P, PL + W + P, C), jnp.bfloat16),  # halo windows
            pltpu.VMEM(w1.shape, jnp.bfloat16),
            pltpu.VMEM(wdil.shape, jnp.bfloat16),
            pltpu.VMEM(wproj4.shape, jnp.bfloat16),
            pltpu.SemaphoreType.DMA((5,)),
        ],
        compiler_params=pltpu.CompilerParams(
            dimension_semantics=("parallel", "arbitrary"),
            vmem_limit_bytes=vmem_limit),
    )(x_padh, w1, wdil, wproj4, z5tot, bias_b)


# ----------------------------------------------------------------------------
# Pooled branch: tiled global mean -> 1x1 conv -> BN -> ReLU -> its proj block
# ----------------------------------------------------------------------------
def _gap_kernel(x_ref, wg_ref, wp5_ref, bb_ref, bp_ref, o_ref, acc_ref, *, inv_hw):
    j = pl.program_id(1)

    @pl.when(j == 0)
    def _():
        acc_ref[...] = jnp.zeros_like(acc_ref)

    xv = x_ref[0].astype(jnp.float32)                   # (thp, W, C)
    s = jnp.sum(xv, axis=0)                             # (W, C)
    acc_ref[...] += jnp.sum(s, axis=0, keepdims=True)   # (1, C)

    @pl.when(j == pl.num_programs(1) - 1)
    def _():
        mean = acc_ref[...] * inv_hw                    # zero pad rows don't change sum
        y = jnp.dot(mean.astype(wg_ref.dtype), wg_ref[...],
                    preferred_element_type=jnp.float32)
        y = jnp.maximum(y + bb_ref[...], 0.0)
        z = jnp.dot(y.astype(wp5_ref.dtype), wp5_ref[...],
                    preferred_element_type=jnp.float32)
        o_ref[0] = z + bp_ref[...]


def global_pool_branch(x_padh, wgap, wproj5, bias_b, bias_p, *, hw, thp, vmem_limit):
    N, Hp, W, C = x_padh.shape
    n_j = Hp // thp
    kernel = functools.partial(_gap_kernel, inv_hw=1.0 / float(hw))
    return pl.pallas_call(
        kernel,
        out_shape=jax.ShapeDtypeStruct((N, 1, 256), jnp.float32),
        grid=(N, n_j),
        in_specs=[
            pl.BlockSpec((1, thp, W, C), lambda n, j: (n, j, 0, 0)),
            pl.BlockSpec((C, 256), lambda n, j: (0, 0)),
            pl.BlockSpec((256, 256), lambda n, j: (0, 0)),
            pl.BlockSpec((1, 256), lambda n, j: (0, 0)),
            pl.BlockSpec((1, 256), lambda n, j: (0, 0)),
        ],
        out_specs=pl.BlockSpec((1, 1, 256), lambda n, j: (n, 0, 0)),
        scratch_shapes=[pltpu.VMEM((1, C), jnp.float32)],
        compiler_params=pltpu.CompilerParams(
            dimension_semantics=("parallel", "arbitrary"),
            vmem_limit_bytes=vmem_limit),
    )(x_padh, wgap, wproj5, bias_b, bias_p)


# ----------------------------------------------------------------------------
# Tiling helpers (generation aware)
# ----------------------------------------------------------------------------
def _pick_h_tile(H, W, C, P, budget_bytes):
    lane_c = _round_up(C, 128)
    PL = _round_up(P, 8)
    width = _round_up(PL + W + P, 8)

    def vmem_need(th):
        rows = _round_up(th * W, 8)
        xwin = 2 * (th + 2 * P) * width * lane_c * 2     # bf16 halo windows (x2 slots)
        wts = (28 * C + 4 * 256) * 256 * 2               # single-buffered weights
        outb = 2 * rows * 256 * 4                        # double-buffered f32 out blocks
        tmps = 4 * rows * 256 * 4                        # acc / branch activations
        return xwin + wts + outb + tmps

    valid = [t for t in range(1, H + 1)
             if H % t == 0 and ((t * W) % 8 == 0 or t == H)]
    for t in sorted(valid, reverse=True):
        if vmem_need(t) <= budget_bytes:
            return t
    return min(valid)


def _pick_gap_tile(Hp, W, C, budget_bytes):
    lane_c = _round_up(C, 128)
    for t in range(min(Hp, 512), 0, -1):
        if Hp % t == 0 and 2 * t * _round_up(W, 8) * lane_c * 2 <= budget_bytes:
            return t
    return 1


# ----------------------------------------------------------------------------
# Parameters (deterministic Kaiming-normal conv weights; BN gamma=1, beta=0)
# ----------------------------------------------------------------------------
def init_aspp_params(key, inplanes, output_stride=16):
    if output_stride == 16:
        dilations = [1, 6, 12, 18]
    elif output_stride == 8:
        dilations = [1, 12, 24, 36]
    else:
        raise NotImplementedError

    def kaiming(k, shape):
        fan_in = shape[1] * shape[2] * shape[3]  # OIHW
        return jax.random.normal(k, shape, jnp.float32) * (2.0 / fan_in) ** 0.5

    ks = jax.random.split(key, 6)
    params = {
        "dilations": dilations,
        "w_aspp1": kaiming(ks[0], (256, inplanes, 1, 1)),
        "w_aspp2": kaiming(ks[1], (256, inplanes, 3, 3)),
        "w_aspp3": kaiming(ks[2], (256, inplanes, 3, 3)),
        "w_aspp4": kaiming(ks[3], (256, inplanes, 3, 3)),
        "w_gap":   kaiming(ks[4], (256, inplanes, 1, 1)),
        "w_proj":  kaiming(ks[5], (256, 1280, 1, 1)),
    }
    # Folded inference BN (all BNs share the same init): scale = 1/sqrt(var+eps).
    params["bn_scale"] = jnp.full((256,), 1.0 / jnp.sqrt(1.0 + BN_EPS), jnp.float32)
    params["bn_bias"] = jnp.zeros((256,), jnp.float32)
    return params


# ----------------------------------------------------------------------------
# ASPP forward wrapper: NCHW in -> NCHW out (matching the PyTorch module)
# ----------------------------------------------------------------------------
def aspp_forward(x_nchw, params, *, h_tile=None, pack_taps=None, nchw_output=True):
    N, C, H, W = x_nchw.shape
    dils = list(params["dilations"])
    P = max(dils)
    scale = params["bn_scale"]
    bias = params["bn_bias"]

    vmem_limit = min(int(_tpu_vmem_bytes() * 0.85), 100 * 1024 * 1024)
    if pack_taps is None:
        pack_taps = C < 128   # pack 3x3 taps into one K=9*C matmul when Cin is small

    # NCHW -> NHWC (lane-dense channels) in bf16; pad H only -- the W halo lives
    # in the kernel's VMEM window, not in HBM.
    x_nhwc = jnp.transpose(x_nchw, (0, 2, 3, 1)).astype(jnp.bfloat16)
    x_padh = jnp.pad(x_nhwc, ((0, 0), (P, P), (0, 0), (0, 0)))

    # Fold BN scale into weights, (Cin, Cout) layout, bf16 MXU operands.
    w1 = (params["w_aspp1"].reshape(256, C).T * scale[None, :]).astype(jnp.bfloat16)
    wd = jnp.stack([jnp.transpose(params[nm], (2, 3, 1, 0)).reshape(9, C, 256)
                    for nm in ("w_aspp2", "w_aspp3", "w_aspp4")], axis=0)
    wd = wd * scale[None, None, None, :]
    wdil = (wd.reshape(3, 9 * C, 256) if pack_taps
            else wd.reshape(27, C, 256)).astype(jnp.bfloat16)
    wgap = (params["w_gap"].reshape(256, C).T * scale[None, :]).astype(jnp.bfloat16)
    wproj = params["w_proj"].reshape(256, 1280).T * scale[None, :]     # (1280, 256)
    wproj4 = wproj[:1024].reshape(4, 256, 256).astype(jnp.bfloat16)    # branches 1-4
    wproj5 = wproj[1024:].astype(jnp.bfloat16)                         # pooled branch
    bias_b = bias.reshape(1, 256).astype(jnp.float32)                  # branch BN bias
    bias_p = bias.reshape(1, 256).astype(jnp.float32)                  # proj BN bias

    # Pooled branch (bilinear upsample of a 1x1 source == broadcast); reads the
    # same HBM array as the fused kernel, already projected + proj-BN bias.
    thp = _pick_gap_tile(H + 2 * P, W, C, 8 * 1024 * 1024)
    z5tot = global_pool_branch(x_padh, wgap, wproj5, bias_b, bias_p,
                               hw=H * W, thp=thp, vmem_limit=vmem_limit)

    if h_tile is not None:
        th = int(h_tile)
        assert H % th == 0 and ((th * W) % 8 == 0 or th == H), "invalid h_tile"
    else:
        th = _pick_h_tile(H, W, C, P, int(vmem_limit * 0.6))

    out_flat = aspp_fused(x_padh, w1, wdil, wproj4, z5tot, bias_b,
                          dils=dils, P=P, H=H, W=W, C=C, th=th,
                          pack_taps=pack_taps, vmem_limit=vmem_limit)
    out = out_flat.reshape(N, H, W, 256)    # free: splits the row-major row axis
    # dropout=None in this config -> identity
    if not nchw_output:
        return out                           # NHWC (preferred layout for TPU consumers)
    return jnp.transpose(out, (0, 3, 1, 2)).astype(jnp.float32)


# ----------------------------------------------------------------------------
# Pure-JAX f32 reference for correctness checking
# ----------------------------------------------------------------------------
def _conv_bn_relu_ref(x_nchw, w, padding, dilation):
    y = jax.lax.conv_general_dilated(
        x_nchw, w, window_strides=(1, 1),
        padding=[(padding, padding), (padding, padding)],
        rhs_dilation=(dilation, dilation),
        dimension_numbers=("NCHW", "OIHW", "NCHW"))
    y = y / jnp.sqrt(1.0 + BN_EPS)
    return jnp.maximum(y, 0.0)


def aspp_forward_ref(x_nchw, params):
    dils = params["dilations"]
    x1 = _conv_bn_relu_ref(x_nchw, params["w_aspp1"], 0, dils[0])
    x2 = _conv_bn_relu_ref(x_nchw, params["w_aspp2"], dils[1], dils[1])
    x3 = _conv_bn_relu_ref(x_nchw, params["w_aspp3"], dils[2], dils[2])
    x4 = _conv_bn_relu_ref(x_nchw, params["w_aspp4"], dils[3], dils[3])
    xm = jnp.mean(x_nchw, axis=(2, 3), keepdims=True)
    x5 = _conv_bn_relu_ref(xm, params["w_gap"], 0, 1)
    x5 = jnp.broadcast_to(x5, x4.shape[:1] + (256,) + x4.shape[2:])
    cat = jnp.concatenate((x1, x2, x3, x4, x5), axis=1)
    return _conv_bn_relu_ref(cat, params["w_proj"], 0, 1)


# ----------------------------------------------------------------------------
if __name__ == "__main__":
    key = jax.random.PRNGKey(0)
    k_in, k_par = jax.random.split(key)

    N, Cin, H, W = 2, 4, 16, 16
    x = jax.random.normal(k_in, (N, Cin, H, W), dtype=jnp.float32)
    params = init_aspp_params(k_par, Cin, output_stride=16)

    ref = jax.block_until_ready(aspp_forward_ref(x, params))

    def check(out, tag):
        assert out.shape == (N, 256, H, W), (tag, out.shape)
        err = float(jnp.max(jnp.abs(out - ref)))
        assert jnp.allclose(out, ref, atol=5e-2, rtol=5e-2), (
            f"{tag}: mismatch vs JAX reference, max abs err = {err}")

    # 1) default config: packed-tap path, auto tile (single H tile per sample).
    check(jax.block_until_ready(aspp_forward(x, params)), "default")
    # 2) multi-tile config: exercises the double-buffered halo-window DMA path.
    check(jax.block_until_ready(aspp_forward(x, params, h_tile=4)), "h_tile=4")
    # 3) per-tap (large-Cin style) compute path.
    check(jax.block_until_ready(aspp_forward(x, params, h_tile=8, pack_taps=False)),
          "per-tap")

    print("KERNEL_OK")
</pallas_src>

<mosaic_0001>
module attributes {stable_mosaic.version = 11 : i64} {
  func.func @_gap_kernel(%arg0: i32, %arg1: i32, %arg2: memref<1x52x16x4xbf16, #tpu.memory_space<vmem>>, %arg3: memref<4x256xbf16, #tpu.memory_space<vmem>>, %arg4: memref<256x256xbf16, #tpu.memory_space<vmem>>, %arg5: memref<1x256xf32, #tpu.memory_space<vmem>>, %arg6: memref<1x256xf32, #tpu.memory_space<vmem>>, %arg7: memref<1x1x256xf32, #tpu.memory_space<vmem>>, %arg8: memref<1x4xf32, #tpu.memory_space<vmem>>) attributes {dimension_semantics = [#tpu.dimension_semantics<parallel>, #tpu.dimension_semantics<arbitrary>], iteration_bounds = array<i64: 2, 1>, scalar_prefetch = 0 : i64, scratch_operands = 1 : i64, tpu.core_type = #tpu.core_type<tc>, window_params = [{transform_indices = @transform_0, window_bounds = array<i64: 1, 52, 16, 4>}, {pipeline_mode = #tpu.pipeline_mode<synchronous>, transform_indices = @transform_1, window_bounds = array<i64: 4, 256>}, {pipeline_mode = #tpu.pipeline_mode<synchronous>, transform_indices = @transform_2, window_bounds = array<i64: 256, 256>}, {pipeline_mode = #tpu.pipeline_mode<synchronous>, transform_indices = @transform_3, window_bounds = array<i64: 1, 256>}, {pipeline_mode = #tpu.pipeline_mode<synchronous>, transform_indices = @transform_4, window_bounds = array<i64: 1, 256>}, {transform_indices = @transform_5, window_bounds = array<i64: 1, 1, 256>}]} {
    %c0_i32 = arith.constant 0 : i32
    %0 = arith.cmpi eq, %arg1, %c0_i32 : i32
    %1 = arith.extui %0 : i1 to i32
    %c0_i32_0 = arith.constant 0 : i32
    %2 = arith.cmpi ne, %1, %c0_i32_0 : i32
    scf.if %2 {
      %cst_11 = arith.constant 0.000000e+00 : f32
      %15 = vector.broadcast %cst_11 : f32 to vector<1x4xf32>
      %c0_12 = arith.constant 0 : index
      %c0_13 = arith.constant 0 : index
      %16 = vector.load %arg8[%c0_12, %c0_13] : memref<1x4xf32, #tpu.memory_space<vmem>>, vector<1x4xf32>
      tpu.vector_store %arg8[%c0_12, %c0_13], %15 {strides = array<i32>} : memref<1x4xf32, #tpu.memory_space<vmem>>, vector<1x4xf32>,
    } else {
    }
    %c0 = arith.constant 0 : index
    %c0_1 = arith.constant 0 : index
    %c0_2 = arith.constant 0 : index
    %c0_3 = arith.constant 0 : index
    %3 = vector.load %arg2[%c0, %c0_1, %c0_2, %c0_3] : memref<1x52x16x4xbf16, #tpu.memory_space<vmem>>, vector<1x52x16x4xbf16>
    %4 = vector.shape_cast %3 : vector<1x52x16x4xbf16> to vector<52x16x4xbf16>
    %5 = arith.extf %4 : vector<52x16x4xbf16> to vector<52x16x4xf32>
    %cst = arith.constant dense<0.000000e+00> : vector<16x4xf32>
    %6 = vector.multi_reduction <add>, %5, %cst [0] : vector<52x16x4xf32> to vector<16x4xf32>
    %c0_4 = arith.constant 0 : index
    %c0_5 = arith.constant 0 : index
    %7 = vector.load %arg8[%c0_4, %c0_5] : memref<1x4xf32, #tpu.memory_space<vmem>>, vector<1x4xf32>
    %cst_6 = arith.constant dense<0.000000e+00> : vector<4xf32>
    %8 = vector.multi_reduction <add>, %6, %cst_6 [0] : vector<16x4xf32> to vector<4xf32>
    %9 = vector.shape_cast %8 : vector<4xf32> to vector<1x4xf32>
    %10 = arith.addf %7, %9 : vector<1x4xf32>
    %c0_7 = arith.constant 0 : index
    %c0_8 = arith.constant 0 : index
    %11 = vector.load %arg8[%c0_7, %c0_8] : memref<1x4xf32, #tpu.memory_space<vmem>>, vector<1x4xf32>
    tpu.vector_store %arg8[%c0_7, %c0_8], %10 {strides = array<i32>} : memref<1x4xf32, #tpu.memory_space<vmem>>, vector<1x4xf32>,
    %c0_i32_9 = arith.constant 0 : i32
    %12 = arith.cmpi eq, %arg1, %c0_i32_9 : i32
    %13 = arith.extui %12 : i1 to i32
    %c0_i32_10 = arith.constant 0 : i32
    %14 = arith.cmpi ne, %13, %c0_i32_10 : i32
    scf.if %14 {
      %c0_11 = arith.constant 0 : index
      %c0_12 = arith.constant 0 : index
      %15 = vector.load %arg8[%c0_11, %c0_12] : memref<1x4xf32, #tpu.memory_space<vmem>>, vector<1x4xf32>
      %cst_13 = arith.constant 3.906250e-03 : f32
      %16 = vector.broadcast %cst_13 : f32 to vector<1x4xf32>
      %17 = arith.mulf %15, %16 : vector<1x4xf32>
      %18 = arith.truncf %17 : vector<1x4xf32> to vector<1x4xbf16>
      %c0_14 = arith.constant 0 : index
      %c0_15 = arith.constant 0 : index
      %19 = vector.load %arg3[%c0_14, %c0_15] : memref<4x256xbf16, #tpu.memory_space<vmem>>, vector<4x256xbf16>
      %cst_16 = arith.constant dense<0.000000e+00> : vector<1x256xf32>
      %20 = tpu.matmul %18, %19, %cst_16 {dimension_numbers = #tpu.dot_dimension_numbers<[1], [0], [0], [1], [0, 0, 1, 1], [], []>} : vector<1x4xbf16>, vector<4x256xbf16>, vector<1x256xf32> -> vector<1x256xf32>
      %c0_17 = arith.constant 0 : index
      %c0_18 = arith.constant 0 : index
      %21 = vector.load %arg5[%c0_17, %c0_18] : memref<1x256xf32, #tpu.memory_space<vmem>>, vector<1x256xf32>
      %22 = arith.addf %20, %21 : vector<1x256xf32>
      %cst_19 = arith.constant 0.000000e+00 : f32
      %23 = vector.broadcast %cst_19 : f32 to vector<1x256xf32>
      %24 = arith.maximumf %22, %23 : vector<1x256xf32>
      %25 = arith.truncf %24 : vector<1x256xf32> to vector<1x256xbf16>
      %c0_20 = arith.constant 0 : index
      %c0_21 = arith.constant 0 : index
      %26 = vector.load %arg4[%c0_20, %c0_21] : memref<256x256xbf16, #tpu.memory_space<vmem>>, vector<256x256xbf16>
      %cst_22 = arith.constant dense<0.000000e+00> : vector<1x256xf32>
      %27 = tpu.matmul %25, %26, %cst_22 {dimension_numbers = #tpu.dot_dimension_numbers<[1], [0], [0], [1], [0, 0, 1, 1], [], []>} : vector<1x256xbf16>, vector<256x256xbf16>, vector<1x256xf32> -> vector<1x256xf32>
      %c0_23 = arith.constant 0 : index
      %c0_24 = arith.constant 0 : index
      %28 = vector.load %arg6[%c0_23, %c0_24] : memref<1x256xf32, #tpu.memory_space<vmem>>, vector<1x256xf32>
      %29 = arith.addf %27, %28 : vector<1x256xf32>
      %c0_25 = arith.constant 0 : index
      %c0_26 = arith.constant 0 : index
      %c0_27 = arith.constant 0 : index
      %30 = vector.load %arg7[%c0_25, %c0_26, %c0_27] : memref<1x1x256xf32, #tpu.memory_space<vmem>>, vector<1x1x256xf32>
      %31 = vector.shape_cast %30 : vector<1x1x256xf32> to vector<1x256xf32>
      %32 = vector.shape_cast %29 : vector<1x256xf32> to vector<1x1x256xf32>
      tpu.vector_store %arg7[%c0_25, %c0_26, %c0_27], %32 {strides = array<i32>} : memref<1x1x256xf32, #tpu.memory_space<vmem>>, vector<1x1x256xf32>,
    } else {
    }
    return
  }
  func.func @transform_0(%arg0: i32, %arg1: i32) -> (i32, i32, i32, i32) {
    %c0_i32 = arith.constant 0 : i32
    %c0_i32_0 = arith.constant 0 : i32
    %c0_i32_1 = arith.constant 0 : i32
    return %arg0, %arg1, %c0_i32, %c0_i32_0 : i32, i32, i32, i32
  }
  func.func @transform_1(%arg0: i32, %arg1: i32) -> (i32, i32) {
    %c0_i32 = arith.constant 0 : i32
    %c0_i32_0 = arith.constant 0 : i32
    %c0_i32_1 = arith.constant 0 : i32
    return %c0_i32, %c0_i32_0 : i32, i32
  }
  func.func @transform_2(%arg0: i32, %arg1: i32) -> (i32, i32) {
    %c0_i32 = arith.constant 0 : i32
    %c0_i32_0 = arith.constant 0 : i32
    %c0_i32_1 = arith.constant 0 : i32
    return %c0_i32, %c0_i32_0 : i32, i32
  }
  func.func @transform_3(%arg0: i32, %arg1: i32) -> (i32, i32) {
    %c0_i32 = arith.constant 0 : i32
    %c0_i32_0 = arith.constant 0 : i32
    %c0_i32_1 = arith.constant 0 : i32
    return %c0_i32, %c0_i32_0 : i32, i32
  }
  func.func @transform_4(%arg0: i32, %arg1: i32) -> (i32, i32) {
    %c0_i32 = arith.constant 0 : i32
    %c0_i32_0 = arith.constant 0 : i32
    %c0_i32_1 = arith.constant 0 : i32
    return %c0_i32, %c0_i32_0 : i32, i32
  }
  func.func @transform_5(%arg0: i32, %arg1: i32) -> (i32, i32, i32) {
    %c0_i32 = arith.constant 0 : i32
    %c0_i32_0 = arith.constant 0 : i32
    %c0_i32_1 = arith.constant 0 : i32
    return %arg0, %c0_i32, %c0_i32_0 : i32, i32, i32
  }
}

</mosaic_0001>

<bundles_post_ra>
// kernel: tpu_custom_call.1
= control target key start
LH: loop header
LB: loop body
LE: loop exit
PB: predicated region body
PF: predicated region fallthrough
CT: control target
= control target key end

     0   :  { %10 = vsyncpa [#allocation4], 0  ;;  %s2188_s0 = inlined_call_operand.vmem [shape: bf16[2,52,16,4], index: 0, kind: input, shape index: {}]   ;;  %s2189_s1 = inlined_call_operand.vmem [shape: bf16[4,256], index: 1, kind: input, shape index: {}]   ;;  %s2190_s2 = inlined_call_operand.vmem [shape: bf16[256,256], index: 2, kind: input, shape index: {}]   ;;  %s2191_s3 = inlined_call_operand.vmem [shape: f32[1,256], index: 3, kind: input, shape index: {}]   ;;  %s2192_s4 = inlined_call_operand.vmem [shape: f32[1,256], index: 4, kind: input, shape index: {}]   ;;  %s2193_s5 = inlined_call_operand.hbm [shape: f32[2,1,256], index: 5, kind: output, shape index: {}]  }
   0x1   :  { %12 = vsyncpa [#allocation4 + $0x1], 0  ;;  %s1657_s18 = smov 0   ;;  %s1659_s19 = smov 0  }
   0x2   :  { %s1661_s20 = smov 0   ;;  %s1663_s21 = smov 0  }
   0x3   :  { %s1665_s22 = smov 0   ;;  %s1667_s23 = smov 0  }
   0x4 LB: > { %s1131_s24 = sadd.s32 4294967295, %s1621_s23   ;;  %s1132_s25 = sadd.s32 4294967294, %s1621_s23   ;;  %s1621_s23 = sphi %s1667_s23, %s18_s23   ;;  %s1617_s22 = sphi %s1665_s22, %s2200_s22   ;;  %s1613_s21 = sphi %s1663_s21, %s2199_s21   ;;  %s1609_s20 = sphi %s1661_s20, %s2198_s20   ;;  %s1605_s19 = sphi %s1659_s19, %s2197_s19   ;;  %s1601_s18 = sphi %s1657_s18, %s2196_s18  }
   0x5   : > { %s30_s26 = sadd.s32 1, %s1617_s22  ;;  %s149_s27 = sadd.s32 1, %s1609_s20 }
   0x6   : > { %p32_p0 = scmp.ge.s32.totalorder %s30_s26, 2  ;;  %p159_p1 = scmp.ne.s32.totalorder %s1609_s20, %s1605_s19 }
   0x7   : > { %p160_p2 = scmp.eq.s32.totalorder %s1131_s24, 1  ;;  %p165_p3 = scmp.ne.s32.totalorder %s1605_s19, %s1601_s18 }
   0x8   : > { %s2202_s26 = smov (%p32_p0, %s30_s26), 0  ;;  %p166_p5 = scmp.eq.s32.totalorder %s1132_s25, 1 }
   0x9   : > { %p1697_p4 = por %p160_p2, %p159_p1  ;;  %s146_s29 = ssub.s32 %s1617_s22, %s2202_s26 }
   0xa   : > { %p1135_p6 = scmp.ge.s32.totalorder %s1621_s23, 1  ;;  %p147_p7 = scmp.eq.s32.totalorder %s146_s29, 0 }
   0xb   : > { %p1704_p8 = por %p166_p5, %p165_p3  ;;  %p210_p9 = scmp.lt.s32.totalorder %s1621_s23, 3 }
   0xc   : > { %s1710_s6 = scalar_select %p147_p7, %s1609_s20, %s149_s27  }
   0xd   : > { %p211_p10 = pnand %p1135_p6, %p210_p9 }
   0xe   : > { %p244_p11 = scmp.lt.s32.totalorder (!%p211_p10), %s1613_s21, 1  ;;  %s1178_s12 = sshll.u32 (!%p211_p10), %s1613_s21, 5 }
   0xf   : > { %214 = sbr.rel (%p211_p10) target bundleno = 584 (0x248), region = 40  ;;  %s1053_s17 = scalar_lea.hbm (!%p211_p10), %s2193_s5, %s1178_s12 }
  0x10   : > { %s1626_s27 = smov (!%p211_p10), [#allocation3]  }
  0x11   : > { %s1549_s29 = sshll.u32 (!%p211_p10), %s1626_s27, 4  ;;  %s1550_s29 = int_to_ptr.vmem [resolvable:$false] %s1549_s29 }
  0x14   : > { %v1138_v0 = vld.sshfl [vmem:[%s2189_s1] sm:$0x33 pattern:$0x76325410]  ;;  %vm720_vm0 = vcmask 1041408   ;;  %v1623_v3 = vmov 0  }
  0x15   : > { %v705_v1 = vcombine.high %v1138_v0, %v1138_v0  ;;  %v722_v2 = vsel %vm720_vm0, %v1138_v0, 0  ;;  %759 = vmatprep.mubr.bf16.mxu0 %v1623_v3  ;;  %vm259_vm1 = vcmask 24576   ;;  %v1624_v4 = vmov 0.0   ;;  %s245_s9 = scalar_select %p244_p11, %s1613_s21, 1 }
  0x16   : > { %260 = vst.msk [vmem:[#allocation2] sm:$0x1] %vm259_vm1, %v1624_v4  ;;  %vm469_vm2 = vcmask 31744   ;;  %s1551_s21 = scalar_lea.vmem %s1550_s29, 64 }
  0x17   : > { %1139 = vmatprep.subr.msk.bf16.mxu0 %vm720_vm0, %v705_v1  ;;  %s1438_s10 = smul.u32 416, %s245_s9 }
  0x18   : > { %742 = vmatpush1.bf16.msra.mxu0 %v722_v2 }
  0x19   : > { %s1721_s13 = scalar_lea.vmem %s2188_s0, %s1438_s10  ;;  %s240_s10 = sand.u32 1, %s1605_s19  }
  0x1a   : > { %v1180_v5 = vld [vmem:[%s1721_s13] sm:$0xff]   ;;  %v1387_v6 = vld [vmem:[%s1721_s13 + $0x8] sm:$0xff]   ;;  %v1388_v7 = vld [vmem:[%s1721_s13 + $0x10] sm:$0xff]   ;;  %s1136_s11 = sshll.u32 %s240_s10, 1  ;;  %s1041_s24 = scalar_lea.sflag [#allocation4], %s240_s10 }
  0x1b   : > { %v1389_v8 = vld [vmem:[%s1721_s13 + $0x18] sm:$0xff]   ;;  %v1181_v9 = vunpack.c.l.bf16 %v1180_v5  ;;  %v1185_v10 = vunpack.c.l.bf16 %v1387_v6  ;;  %v1189_v11 = vunpack.c.l.bf16 %v1388_v7  ;;  %v1390_v12 = vld [vmem:[%s1721_s13 + $0x20] sm:$0xff]   ;;  %v1729_v14 = vld [vmem:[%s1721_s13 + $0x28] sm:$0xff]   ;;  %v1182_v37 = vunpack.c.h.bf16 %v1180_v5 }
  0x1c   : > { %v1193_v13 = vunpack.c.l.bf16 %v1389_v8  ;;  %v1197_v15 = vunpack.c.l.bf16 %v1390_v12  ;;  %v1735_v19 = vld [vmem:[%s1721_s13 + $0x30] sm:$0xff]   ;;  %v1201_v21 = vunpack.c.l.bf16 %v1729_v14  ;;  %v1740_v23 = vld [vmem:[%s1721_s13 + $0x38] sm:$0xff]   ;;  %v1745_v27 = vld [vmem:[%s1721_s13 + $0x40] sm:$0xff]   ;;  %v1186_v40 = vunpack.c.h.bf16 %v1387_v6 }
  0x1d   : > { %v470_v16 = vsel %vm469_vm2, %v1181_v9, 0.0  ;;  %v471_v17 = vsel %vm469_vm2, %v1185_v10, 0.0  ;;  %v473_v18 = vsel %vm469_vm2, %v1189_v11, 0.0  ;;  %v1205_v25 = vunpack.c.l.bf16 %v1735_v19  ;;  %v1750_v31 = vld [vmem:[%s1721_s13 + $0x48] sm:$0xff]   ;;  %v1755_v35 = vld [vmem:[%s1721_s13 + $0x50] sm:$0xff]   ;;  %v1760_v42 = vld [vmem:[%s1721_s13 + $0x58] sm:$0xff]  }
  0x1e   : > { %v472_v20 = vadd.f32 %v471_v17, %v470_v16  ;;  %v475_v22 = vsel %vm469_vm2, %v1193_v13, 0.0  ;;  %v477_v26 = vsel %vm469_vm2, %v1197_v15, 0.0  ;;  %v1209_v29 = vunpack.c.l.bf16 %v1740_v23  ;;  %v1765_v47 = vld [vmem:[%s1721_s13 + $0x60] sm:$0xff]   ;;  %v1771_v53 = vld [vmem:[%s1721_s13 + $0x68] sm:$0xff]   ;;  %v1779_v61 = vld [vmem:[%s1721_s13 + $0x70] sm:$0xff]  }
  0x1f   : > { %v479_v30 = vsel %vm469_vm2, %v1201_v21, 0.0  ;;  %v1213_v33 = vunpack.c.l.bf16 %v1745_v27  ;;  %v481_v34 = vsel %vm469_vm2, %v1205_v25, 0.0  ;;  %v1217_v38 = vunpack.c.l.bf16 %v1750_v31  ;;  %v1786_v4 = vld [vmem:[%s1721_s13 + $0x78] sm:$0xff]   ;;  %v1799_v13 = vld [vmem:[%s1721_s13 + $0x80] sm:$0xff]  }
  0x20   : > { %v474_v24 = vadd.f32 %v473_v18, %v472_v20  ;;  %v483_v39 = vsel %vm469_vm2, %v1209_v29, 0.0  ;;  %v1190_v41 = vunpack.c.h.bf16 %v1388_v7  ;;  %v1221_v44 = vunpack.c.l.bf16 %v1755_v35  ;;  %v1497_v7 = vld [vmem:[%s2190_s2 + $0x74] ss:$8 sps:$4 sm:$0xff]   ;;  %v1499_v11 = vld [vmem:[%s2190_s2 + $0x70] ss:$8 sps:$4 sm:$0xff]  }
  0x21   : > { %v485_v45 = vsel %vm469_vm2, %v1213_v33, 0.0  ;;  %v1194_v46 = vunpack.c.h.bf16 %v1389_v8  ;;  %v1225_v49 = vunpack.c.l.bf16 %v1760_v42  ;;  %v487_v50 = vsel %vm469_vm2, %v1217_v38, 0.0  ;;  %976 = vmatprep.subr.bf16.mxu1 %v1497_v7  ;;  %v1500_v16 = vld [vmem:[%s2190_s2 + $0x64] ss:$8 sps:$4 sm:$0xff]   ;;  %v1502_v20 = vld [vmem:[%s2190_s2 + $0x60] ss:$8 sps:$4 sm:$0xff]  }
  0x22   : > { %v476_v28 = vadd.f32 %v475_v22, %v474_v24  ;;  %v573_v51 = vsel %vm469_vm2, %v1182_v37, 0.0  ;;  %v1198_v52 = vunpack.c.h.bf16 %v1390_v12  ;;  %v574_v55 = vsel %vm469_vm2, %v1186_v40, 0.0  ;;  %977 = vmatpush1.bf16.msra.mxu1 %v1499_v11  ;;  %v1812_v22 = vld [vmem:[%s1721_s13 + $0x88] sm:$0xff]   ;;  %v1503_v25 = vld [vmem:[%s2190_s2 + $0x54] ss:$8 sps:$4 sm:$0xff]  }
  0x23   : > { %v576_v56 = vsel %vm469_vm2, %v1190_v41, 0.0  ;;  %v1229_v57 = vunpack.c.l.bf16 %v1765_v47  ;;  %v489_v58 = vsel %vm469_vm2, %v1221_v44, 0.0  ;;  %v575_v59 = vadd.f32 %v574_v55, %v573_v51  ;;  %978 = vmatprep.subr.bf16.mxu1 %v1500_v16  ;;  %v1505_v38 = vld [vmem:[%s2190_s2 + $0x50] ss:$8 sps:$4 sm:$0xff]   ;;  %v1508_v55 = vld [vmem:[%s2190_s2 + $0x40] ss:$8 sps:$4 sm:$0xff]  }
  0x24   : > { %v478_v32 = vadd.f32 %v477_v26, %v476_v28  ;;  %v1202_v60 = vunpack.c.h.bf16 %v1729_v14  ;;  %v578_v63 = vsel %vm469_vm2, %v1194_v46, 0.0  ;;  %v1233_v0 = vunpack.c.l.bf16 %v1771_v53  ;;  %v1832_v40 = vld [vmem:[%s1721_s13 + $0x98] sm:$0xff]   ;;  %v1512_v11 = vld [vmem:[%s2190_s2 + $0x24] ss:$8 sps:$4 sm:$0xff]  }
  0x25   : > { %v491_v1 = vsel %vm469_vm2, %v1225_v49, 0.0  ;;  %v577_v2 = vadd.f32 %v576_v56, %v575_v59  ;;  %v1206_v3 = vunpack.c.h.bf16 %v1735_v19  ;;  %v580_v6 = vsel %vm469_vm2, %v1198_v52, 0.0  ;;  %v1842_v49 = vld [vmem:[%s1721_s13 + $0xa0] sm:$0xff]   ;;  %v1509_v59 = vld [vmem:[%s2190_s2 + $0x34] ss:$8 sps:$4 sm:$0xff]  }
  0x26   : > { %v480_v36 = vadd.f32 %v479_v30, %v478_v32  ;;  %v1237_v8 = vunpack.c.l.bf16 %v1779_v61  ;;  %v493_v9 = vsel %vm469_vm2, %v1229_v57, 0.0  ;;  %v1210_v12 = vunpack.c.h.bf16 %v1740_v23  ;;  %v1822_v32 = vld [vmem:[%s1721_s13 + $0x90] sm:$0xff]   ;;  %979 = vmatpush1.bf16.msra.mxu1 %v1502_v20  ;;  %v1852_v57 = vld [vmem:[%s1721_s13 + $0xa8] sm:$0xff]  }
  0x27   : > { %v579_v10 = vadd.f32 %v578_v63, %v577_v2  ;;  %v582_v15 = vsel %vm469_vm2, %v1202_v60, 0.0  ;;  %v1241_v17 = vunpack.c.l.bf16 %v1786_v4  ;;  %v495_v18 = vsel %vm469_vm2, %v1233_v0, 0.0  ;;  %980 = vmatprep.subr.bf16.mxu1 %v1503_v25  ;;  %v1511_v7 = vld [vmem:[%s2190_s2 + $0x30] ss:$8 sps:$4 sm:$0xff]   ;;  %v1892_v25 = vld [vmem:[%s1721_s13 + $0xc8] sm:$0xff]  }
  0x28   : > { %v482_v43 = vadd.f32 %v481_v34, %v480_v36  ;;  %v1214_v21 = vunpack.c.h.bf16 %v1745_v27  ;;  %v584_v24 = vsel %vm469_vm2, %v1206_v3, 0.0  ;;  %v1245_v26 = vunpack.c.l.bf16 %v1799_v13 }
  0x29   : > { %v581_v19 = vadd.f32 %v580_v6, %v579_v10  ;;  %v497_v28 = vsel %vm469_vm2, %v1237_v8, 0.0  ;;  %v1218_v30 = vunpack.c.h.bf16 %v1750_v31  ;;  %v586_v33 = vsel %vm469_vm2, %v1210_v12, 0.0 }
  0x2a   : > { %v484_v48 = vadd.f32 %v483_v39, %v482_v43  ;;  %v1249_v34 = vunpack.c.l.bf16 %v1812_v22  ;;  %v499_v36 = vsel %vm469_vm2, %v1241_v17, 0.0  ;;  %v1222_v39 = vunpack.c.h.bf16 %v1755_v35  ;;  %v1506_v43 = vld [vmem:[%s2190_s2 + $0x44] ss:$8 sps:$4 sm:$0xff]   ;;  %981 = vmatpush1.bf16.msra.mxu1 %v1505_v38 }
  0x2b   : > { %v583_v29 = vadd.f32 %v582_v15, %v581_v19  ;;  %v588_v41 = vsel %vm469_vm2, %v1214_v21, 0.0  ;;  %v1253_v44 = vunpack.c.l.bf16 %v1822_v32  ;;  %v1257_v51 = vunpack.c.l.bf16 %v1832_v40  ;;  %982 = vmatprep.subr.bf16.mxu1 %v1506_v43  ;;  %v1882_v17 = vld [vmem:[%s1721_s13 + $0xc0] sm:$0xff]   ;;  %v1912_v43 = vld [vmem:[%s1721_s13 + $0xd8] sm:$0xff]  }
  0x2c   : > { %v486_v54 = vadd.f32 %v485_v45, %v484_v48  ;;  %v501_v45 = vsel %vm469_vm2, %v1245_v26, 0.0  ;;  %v1226_v48 = vunpack.c.h.bf16 %v1760_v42  ;;  %v503_v52 = vsel %vm469_vm2, %v1249_v34, 0.0  ;;  %v1902_v34 = vld [vmem:[%s1721_s13 + $0xd0] sm:$0xff]  }
  0x2d   : > { %v585_v37 = vadd.f32 %v584_v24, %v583_v29  ;;  %v1230_v56 = vunpack.c.h.bf16 %v1765_v47  ;;  %v1261_v60 = vunpack.c.l.bf16 %v1842_v49  ;;  %v1234_v0 = vunpack.c.h.bf16 %v1771_v53 }
  0x2e   : > { %v488_v62 = vadd.f32 %v487_v50, %v486_v54  ;;  %v590_v50 = vsel %vm469_vm2, %v1218_v30, 0.0  ;;  %v594_v2 = vsel %vm469_vm2, %v1226_v48, 0.0  ;;  %v1265_v3 = vunpack.c.l.bf16 %v1852_v57  ;;  %983 = vmatpush1.bf16.msra.mxu1 %v1508_v55 }
  0x2f   : > { %v587_v46 = vadd.f32 %v586_v33, %v585_v37  ;;  %v1238_v8 = vunpack.c.h.bf16 %v1779_v61  ;;  %v596_v10 = vsel %vm469_vm2, %v1230_v56, 0.0  ;;  %984 = vmatprep.subr.bf16.mxu1 %v1509_v59  ;;  %v1242_v16 = vunpack.c.h.bf16 %v1786_v4  ;;  %v1932_v59 = vld [vmem:[%s1721_s13 + $0xe8] sm:$0xff]  }
  0x30   : > { %v490_v5 = vadd.f32 %v489_v58, %v488_v62  ;;  %v592_v58 = vsel %vm469_vm2, %v1222_v39, 0.0  ;;  %v505_v62 = vsel %vm469_vm2, %v1253_v44, 0.0  ;;  %v511_v20 = vsel %vm469_vm2, %v1265_v3, 0.0  ;;  %v1942_v3 = vld [vmem:[%s1721_s13 + $0xf0] sm:$0xff]  }
  0x31   : > { %v589_v54 = vadd.f32 %v588_v41, %v587_v46  ;;  %v1246_v24 = vunpack.c.h.bf16 %v1799_v13  ;;  %v600_v26 = vsel %vm469_vm2, %v1238_v8, 0.0  ;;  %v1277_v29 = vunpack.c.l.bf16 %v1882_v17 }
  0x32   : > { %v492_v14 = vadd.f32 %v491_v1, %v490_v5  ;;  %v1862_v1 = vld [vmem:[%s1721_s13 + $0xb0] sm:$0xff]   ;;  %v507_v5 = vsel %vm469_vm2, %v1257_v51, 0.0  ;;  %985 = vmatpush1.bf16.msra.mxu1 %v1511_v7  ;;  %v1250_v33 = vunpack.c.h.bf16 %v1812_v22  ;;  %v1281_v37 = vunpack.c.l.bf16 %v1892_v25  ;;  %v1922_v51 = vld [vmem:[%s1721_s13 + $0xe0] sm:$0xff]  }
  0x33   : > { %v591_v63 = vadd.f32 %v590_v50, %v589_v54  ;;  %v1269_v12 = vunpack.c.l.bf16 %v1862_v1  ;;  %986 = vmatprep.subr.bf16.mxu1 %v1512_v11  ;;  %v1254_v41 = vunpack.c.h.bf16 %v1822_v32  ;;  %v604_v44 = vsel %vm469_vm2, %v1246_v24, 0.0  ;;  %v1952_v11 = vld [vmem:[%s1721_s13 + $0xf8] sm:$0xff]  }
  0x34   : > { %v494_v23 = vadd.f32 %v493_v9, %v492_v14  ;;  %v1872_v9 = vld [vmem:[%s1721_s13 + $0xb8] sm:$0xff]   ;;  %v509_v14 = vsel %vm469_vm2, %v1261_v60, 0.0  ;;  %v1285_v46 = vunpack.c.l.bf16 %v1902_v34  ;;  %v517_v48 = vsel %vm469_vm2, %v1277_v29, 0.0 }
  0x35   : > { %v593_v6 = vadd.f32 %v592_v58, %v591_v63  ;;  %v1273_v19 = vunpack.c.l.bf16 %v1872_v9  ;;  %v513_v30 = vsel %vm469_vm2, %v1269_v12, 0.0  ;;  %v1258_v50 = vunpack.c.h.bf16 %v1832_v40 }
  0x36   : > { %v496_v27 = vadd.f32 %v495_v18, %v494_v23  ;;  %v598_v18 = vsel %vm469_vm2, %v1234_v0, 0.0  ;;  %v1514_v23 = vld [vmem:[%s2190_s2 + $0x20] ss:$8 sps:$4 sm:$0xff]   ;;  %v1289_v54 = vunpack.c.l.bf16 %v1912_v43  ;;  %v519_v55 = vsel %vm469_vm2, %v1281_v37, 0.0  ;;  %v1982_v37 = vld [vmem:[%s1721_s13 + $0x110] sm:$0xff]  }
  0x37   : > { %v595_v15 = vadd.f32 %v594_v2, %v593_v6  ;;  %v515_v38 = vsel %vm469_vm2, %v1273_v19, 0.0  ;;  %987 = vmatpush1.bf16.msra.mxu1 %v1514_v23  ;;  %v1262_v58 = vunpack.c.h.bf16 %v1842_v49  ;;  %v608_v60 = vsel %vm469_vm2, %v1254_v41, 0.0  ;;  %v1962_v19 = vld [vmem:[%s1721_s13 + $0x100] sm:$0xff]  }
  0x38   : > { %v498_v31 = vadd.f32 %v497_v28, %v496_v27  ;;  %v1515_v28 = vld [vmem:[%s2190_s2 + $0x14] ss:$8 sps:$4 sm:$0xff]   ;;  %v1293_v63 = vunpack.c.l.bf16 %v1922_v51  ;;  %v521_v0 = vsel %vm469_vm2, %v1285_v46, 0.0  ;;  %v1266_v2 = vunpack.c.h.bf16 %v1852_v57 }
  0x39   : > { %v597_v21 = vadd.f32 %v596_v10, %v595_v15  ;;  %988 = vmatprep.subr.bf16.mxu1 %v1515_v28  ;;  %v1297_v6 = vunpack.c.l.bf16 %v1932_v59  ;;  %v523_v7 = vsel %vm469_vm2, %v1289_v54, 0.0  ;;  %v1270_v10 = vunpack.c.h.bf16 %v1862_v1  ;;  %v1972_v28 = vld [vmem:[%s1721_s13 + $0x108] sm:$0xff]   ;;  %v2002_v54 = vld [vmem:[%s1721_s13 + $0x120] sm:$0xff]  }
  0x3a   : > { %v500_v35 = vadd.f32 %v499_v36, %v498_v31  ;;  %v602_v36 = vsel %vm469_vm2, %v1242_v16, 0.0  ;;  %v1517_v31 = vld [vmem:[%s2190_s2 + $0x10] ss:$8 sps:$4 sm:$0xff]   ;;  %v612_v12 = vsel %vm469_vm2, %v1262_v58, 0.0  ;;  %v1301_v15 = vunpack.c.l.bf16 %v1942_v3 }
  0x3b   : > { %v599_v27 = vadd.f32 %v598_v18, %v597_v21  ;;  %989 = vmatpush1.bf16.msra.mxu1 %v1517_v31  ;;  %v525_v16 = vsel %vm469_vm2, %v1293_v63, 0.0  ;;  %v1274_v18 = vunpack.c.h.bf16 %v1872_v9  ;;  %v1305_v21 = vunpack.c.l.bf16 %v1952_v11 }
  0x3c   : > { %v502_v42 = vadd.f32 %v501_v45, %v500_v35  ;;  %v1518_v45 = vld [vmem:[%s2190_s2 + $0x4] ss:$8 sps:$4 sm:$0xff]   ;;  %v527_v23 = vsel %vm469_vm2, %v1297_v6, 0.0  ;;  %v616_v29 = vsel %vm469_vm2, %v1270_v10, 0.0  ;;  %v2022_v6 = vld [vmem:[%s1721_s13 + $0x130] sm:$0xff]  }
  0x3d   : > { %v601_v39 = vadd.f32 %v600_v26, %v599_v27  ;;  %990 = vmatprep.subr.bf16.mxu1 %v1518_v45  ;;  %v1278_v26 = vunpack.c.h.bf16 %v1882_v17  ;;  %v1309_v27 = vunpack.c.l.bf16 %v1962_v19  ;;  %v531_v31 = vsel %vm469_vm2, %v1305_v21, 0.0  ;;  %v1992_v45 = vld [vmem:[%s1721_s13 + $0x118] sm:$0xff]   ;;  %v2042_v21 = vld [vmem:[%s1721_s13 + $0x140] sm:$0xff]  }
  0x3e   : > { %v504_v47 = vadd.f32 %v503_v52, %v502_v42  ;;  %v606_v52 = vsel %vm469_vm2, %v1250_v33, 0.0  ;;  %v1520_v42 = vld [vmem:[%s2190_s2] ss:$8 sps:$4 sm:$0xff]   ;;  %v529_v33 = vsel %vm469_vm2, %v1301_v15, 0.0 }
  0x3f   : > { %v603_v35 = vadd.f32 %v602_v36, %v601_v39  ;;  %991 = vmatpush1.bf16.msra.mxu1 %v1520_v42  ;;  %v1282_v36 = vunpack.c.h.bf16 %v1892_v25  ;;  %v1313_v39 = vunpack.c.l.bf16 %v1972_v28  ;;  %v620_v46 = vsel %vm469_vm2, %v1278_v26, 0.0 }
  0x40   : > { %v506_v53 = vadd.f32 %v505_v62, %v504_v47  ;;  %v1521_v62 = vld [vmem:[%s2190_s2 + $0xf4] ss:$8 sps:$4 sm:$0xff]  }
  0x41   : > { %v605_v56 = vadd.f32 %v604_v44, %v603_v35  ;;  %992 = vmatprep.subr.bf16.mxu1 %v1521_v62  ;;  %v1286_v44 = vunpack.c.h.bf16 %v1902_v34  ;;  %v1317_v35 = vunpack.c.l.bf16 %v1982_v37  ;;  %v535_v42 = vsel %vm469_vm2, %v1313_v39, 0.0  ;;  %v2012_v62 = vld [vmem:[%s1721_s13 + $0x128] sm:$0xff]  }
  0x42   : > { %v508_v61 = vadd.f32 %v507_v5, %v506_v53  ;;  %v610_v5 = vsel %vm469_vm2, %v1258_v50, 0.0  ;;  %v1523_v53 = vld [vmem:[%s2190_s2 + $0xf0] ss:$8 sps:$4 sm:$0xff]   ;;  %v533_v50 = vsel %vm469_vm2, %v1309_v27, 0.0 }
  0x43   : > { %v607_v47 = vadd.f32 %v606_v52, %v605_v56  ;;  %993 = vmatpush2.bf16.msra.mxu1 %v1523_v53  ;;  %v1290_v52 = vunpack.c.h.bf16 %v1912_v43  ;;  %v1321_v56 = vunpack.c.l.bf16 %v1992_v45  ;;  %v624_v63 = vsel %vm469_vm2, %v1286_v44, 0.0 }
  0x44   : > { %v510_v4 = vadd.f32 %v509_v14, %v508_v61  ;;  %v1524_v14 = vld [vmem:[%s2190_s2 + $0xe4] ss:$8 sps:$4 sm:$0xff]   ;;  %v1318_v44 = vunpack.c.h.bf16 %v1982_v37 }
  0x45   : > { %v609_v8 = vadd.f32 %v608_v60, %v607_v47  ;;  %994 = vmatprep.subr.bf16.mxu1 %v1524_v14  ;;  %v1294_v60 = vunpack.c.h.bf16 %v1922_v51  ;;  %v1325_v47 = vunpack.c.l.bf16 %v2002_v54  ;;  %v539_v53 = vsel %vm469_vm2, %v1321_v56, 0.0  ;;  %v2032_v14 = vld [vmem:[%s1721_s13 + $0x138] sm:$0xff]  }
  0x46   : > { %v512_v13 = vadd.f32 %v511_v20, %v510_v4  ;;  %v614_v20 = vsel %vm469_vm2, %v1266_v2, 0.0  ;;  %v1526_v4 = vld [vmem:[%s2190_s2 + $0xe0] ss:$8 sps:$4 sm:$0xff]   ;;  %v537_v2 = vsel %vm469_vm2, %v1317_v35, 0.0 }
  0x47   : > { %v611_v61 = vadd.f32 %v610_v5, %v609_v8  ;;  %995 = vmatpush2.bf16.msra.mxu1 %v1526_v4  ;;  %v1298_v5 = vunpack.c.h.bf16 %v1932_v59  ;;  %v1329_v8 = vunpack.c.l.bf16 %v2012_v62  ;;  %v628_v15 = vsel %vm469_vm2, %v1294_v60, 0.0 }
  0x48   : > { %v514_v22 = vadd.f32 %v513_v30, %v512_v13  ;;  %v1527_v30 = vld [vmem:[%s2190_s2 + $0xd4] ss:$8 sps:$4 sm:$0xff]  }
  0x49   : > { %v613_v24 = vadd.f32 %v612_v12, %v611_v61  ;;  %996 = vmatprep.subr.bf16.mxu1 %v1527_v30  ;;  %v1302_v12 = vunpack.c.h.bf16 %v1942_v3  ;;  %v1333_v61 = vunpack.c.l.bf16 %v2022_v6  ;;  %v543_v4 = vsel %vm469_vm2, %v1329_v8, 0.0  ;;  %v2052_v30 = vld [vmem:[%s1721_s13 + $0x148] sm:$0xff]  }
  0x4a   : > { %v516_v32 = vadd.f32 %v515_v38, %v514_v22  ;;  %v618_v38 = vsel %vm469_vm2, %v1274_v18, 0.0  ;;  %v1529_v22 = vld [vmem:[%s2190_s2 + $0xd0] ss:$8 sps:$4 sm:$0xff]   ;;  %v541_v18 = vsel %vm469_vm2, %v1325_v47, 0.0  ;;  %v1330_v47 = vunpack.c.h.bf16 %v2012_v62 }
  0x4b   : > { %v615_v13 = vadd.f32 %v614_v20, %v613_v24  ;;  %997 = vmatpush2.bf16.msra.mxu1 %v1529_v22  ;;  %v1306_v20 = vunpack.c.h.bf16 %v1952_v11  ;;  %v1337_v24 = vunpack.c.l.bf16 %v2032_v14  ;;  %v632_v27 = vsel %vm469_vm2, %v1302_v12, 0.0 }
  0x4c   : > { %v518_v40 = vadd.f32 %v517_v48, %v516_v32  ;;  %v1530_v48 = vld [vmem:[%s2190_s2 + $0xc4] ss:$8 sps:$4 sm:$0xff]   ;;  %v1334_v8 = vunpack.c.h.bf16 %v2022_v6  ;;  %v1338_v62 = vunpack.c.h.bf16 %v2032_v14 }
  0x4d   : > { %v617_v41 = vadd.f32 %v616_v29, %v615_v13  ;;  %998 = vmatprep.subr.bf16.mxu1 %v1530_v48  ;;  %v1310_v29 = vunpack.c.h.bf16 %v1962_v19  ;;  %v545_v13 = vsel %vm469_vm2, %v1333_v61, 0.0  ;;  %v634_v19 = vsel %vm469_vm2, %v1306_v20, 0.0  ;;  %v1433_v61 = vld [vmem:[%s1721_s13 + $0x178] sm:$0xff]  }
  0x4e   : > { %v520_v49 = vadd.f32 %v519_v55, %v518_v40  ;;  %v622_v55 = vsel %vm469_vm2, %v1282_v36, 0.0  ;;  %v1532_v40 = vld [vmem:[%s2190_s2 + $0xc0] ss:$8 sps:$4 sm:$0xff]   ;;  %v1342_v20 = vunpack.c.h.bf16 %v2042_v21 }
  0x4f   : > { %v619_v32 = vadd.f32 %v618_v38, %v617_v41  ;;  %999 = vmatpush2.bf16.msra.mxu1 %v1532_v40  ;;  %v2059_v38 = vld [vmem:[%s1721_s13 + $0x150] sm:$0xff]   ;;  %v547_v41 = vsel %vm469_vm2, %v1337_v24, 0.0  ;;  %v2080_v40 = vld [vmem:[%s1721_s13 + $0x168] sm:$0xff]  }
  0x50   : > { %v522_v57 = vadd.f32 %v521_v0, %v520_v49  ;;  %v1533_v0 = vld [vmem:[%s2190_s2 + $0xb4] ss:$8 sps:$4 sm:$0xff]   ;;  %v1349_v48 = vunpack.c.l.bf16 %v2059_v38 }
  0x51   : > { %v621_v58 = vadd.f32 %v620_v46, %v619_v32  ;;  %1000 = vmatprep.subr.bf16.mxu1 %v1533_v0  ;;  %v1322_v32 = vunpack.c.h.bf16 %v1992_v45 }
  0x52   : > { %v524_v1 = vadd.f32 %v523_v7, %v522_v57  ;;  %v626_v7 = vsel %vm469_vm2, %v1290_v52, 0.0  ;;  %v1535_v57 = vld [vmem:[%s2190_s2 + $0xb0] ss:$8 sps:$4 sm:$0xff]   ;;  %v2073_v52 = vld [vmem:[%s1721_s13 + $0x160] sm:$0xff]  }
  0x53   : > { %v623_v49 = vadd.f32 %v622_v55, %v621_v58  ;;  %1001 = vmatpush2.bf16.msra.mxu1 %v1535_v57  ;;  %v1326_v58 = vunpack.c.h.bf16 %v2002_v54  ;;  %v1357_v45 = vunpack.c.l.bf16 %v2073_v52 }
  0x54   : > { %v526_v9 = vadd.f32 %v525_v16, %v524_v1  ;;  %v1536_v16 = vld [vmem:[%s2190_s2 + $0xa4] ss:$8 sps:$4 sm:$0xff]  }
  0x55   : > { %v625_v10 = vadd.f32 %v624_v63, %v623_v49  ;;  %1002 = vmatprep.subr.bf16.mxu1 %v1536_v16  ;;  %v553_v63 = vsel %vm469_vm2, %v1349_v48, 0.0  ;;  %v642_v49 = vsel %vm469_vm2, %v1322_v32, 0.0  ;;  %v557_v57 = vsel %vm469_vm2, %v1357_v45, 0.0 }
  0x56   : > { %v528_v17 = vadd.f32 %v527_v23, %v526_v9  ;;  %v630_v23 = vsel %vm469_vm2, %v1298_v5, 0.0  ;;  %v1538_v9 = vld [vmem:[%s2190_s2 + $0xa0] ss:$8 sps:$4 sm:$0xff]   ;;  %v1361_v5 = vunpack.c.l.bf16 %v2080_v40  ;;  %v646_v16 = vsel %vm469_vm2, %v1330_v47, 0.0 }
  0x57   : > { %v627_v1 = vadd.f32 %v626_v7, %v625_v10  ;;  %1003 = vmatpush2.bf16.msra.mxu1 %v1538_v9  ;;  %v644_v10 = vsel %vm469_vm2, %v1326_v58, 0.0  ;;  %v650_v9 = vsel %vm469_vm2, %v1338_v62, 0.0 }
  0x58   : > { %v530_v25 = vadd.f32 %v529_v33, %v528_v17  ;;  %v1341_v33 = vunpack.c.l.bf16 %v2042_v21  ;;  %v1314_v17 = vunpack.c.h.bf16 %v1972_v28  ;;  %v636_v28 = vsel %vm469_vm2, %v1310_v29, 0.0  ;;  %v1434_v29 = vld [vmem:[%s1721_s13 + $0x180] sm:$0xff]  }
  0x59   : > { %v629_v26 = vadd.f32 %v628_v15, %v627_v1 }
  0x5a   : > { %v532_v34 = vadd.f32 %v531_v31, %v530_v25  ;;  %v1345_v31 = vunpack.c.l.bf16 %v2052_v30  ;;  %v2066_v25 = vld [vmem:[%s1721_s13 + $0x158] sm:$0xff]   ;;  %v549_v35 = vsel %vm469_vm2, %v1341_v33, 0.0  ;;  %v638_v55 = vsel %vm469_vm2, %v1314_v17, 0.0 }
  0x5b   : > { %v631_v36 = vadd.f32 %v630_v23, %v629_v26  ;;  %v1353_v37 = vunpack.c.l.bf16 %v2066_v25  ;;  %v1346_v23 = vunpack.c.h.bf16 %v2052_v30  ;;  %v652_v33 = vsel %vm469_vm2, %v1342_v20, 0.0 }
  0x5c   : > { %v534_v43 = vadd.f32 %v533_v50, %v532_v34  ;;  %v551_v56 = vsel %vm469_vm2, %v1345_v31, 0.0  ;;  %v1373_v30 = vunpack.c.l.bf16 %v1434_v29 }
  0x5d   : > { %v633_v22 = vadd.f32 %v632_v27, %v631_v36  ;;  %v555_v54 = vsel %vm469_vm2, %v1353_v37, 0.0  ;;  %v1350_v27 = vunpack.c.h.bf16 %v2059_v38  ;;  %v1354_v36 = vunpack.c.h.bf16 %v2066_v25 }
  0x5e   : > { %v536_v51 = vadd.f32 %v535_v42, %v534_v43  ;;  %v640_v43 = vsel %vm469_vm2, %v1318_v44, 0.0  ;;  %v565_v48 = vsel %vm469_vm2, %v1373_v30, 0.0  ;;  %v1542_v30 = vld [vmem:[%s2190_s2 + $0x84] ss:$8 sps:$4 sm:$0xff]  }
  0x5f   : > { %v635_v50 = vadd.f32 %v634_v19, %v633_v22  ;;  %v1435_v19 = vld [vmem:[%s1721_s13 + $0x188] sm:$0xff]   ;;  %v656_v22 = vsel %vm469_vm2, %v1350_v27, 0.0  ;;  %v658_v25 = vsel %vm469_vm2, %v1354_v36, 0.0  ;;  %v1541_v36 = vld [vmem:[%s2190_s2 + $0x90] ss:$8 sps:$4 sm:$0xff]  }
  0x60   : > { %v538_v59 = vadd.f32 %v537_v2, %v536_v51  ;;  %v1432_v51 = vld [vmem:[%s1721_s13 + $0x170] sm:$0xff]   ;;  %v1378_v47 = vunpack.c.h.bf16 %v1435_v19 }
  0x61   : > { %v637_v42 = vadd.f32 %v636_v28, %v635_v50  ;;  %v1377_v28 = vunpack.c.l.bf16 %v1435_v19  ;;  %v1366_v32 = vunpack.c.h.bf16 %v1432_v51 }
  0x62   : > { %v540_v3 = vadd.f32 %v539_v53, %v538_v59  ;;  %v1365_v59 = vunpack.c.l.bf16 %v1432_v51 }
  0x63   : > { %v639_v0 = vadd.f32 %v638_v55, %v637_v42  ;;  %v567_v42 = vsel %vm469_vm2, %v1377_v28, 0.0  ;;  %v664_v45 = vsel %vm469_vm2, %v1366_v32, 0.0 }
  0x64   : > { %v542_v11 = vadd.f32 %v541_v18, %v540_v3  ;;  %v559_v18 = vsel %vm469_vm2, %v1361_v5, 0.0  ;;  %v648_v3 = vsel %vm469_vm2, %v1334_v8, 0.0  ;;  %v561_v26 = vsel %vm469_vm2, %v1365_v59, 0.0 }
  0x65   : > { %v641_v7 = vadd.f32 %v640_v43, %v639_v0  ;;  %v1374_v43 = vunpack.c.h.bf16 %v1434_v29 }
  0x66   : > { %v544_v39 = vadd.f32 %v543_v4, %v542_v11  ;;  %v1369_v4 = vunpack.c.l.bf16 %v1433_v61 }
  0x67   : > { %v643_v12 = vadd.f32 %v642_v49, %v641_v7  ;;  %v668_v7 = vsel %vm469_vm2, %v1374_v43, 0.0 }
  0x68   : > { %v546_v46 = vadd.f32 %v545_v13, %v544_v39  ;;  %v563_v17 = vsel %vm469_vm2, %v1369_v4, 0.0  ;;  %v654_v39 = vsel %vm469_vm2, %v1346_v23, 0.0 }
  0x69   : > { %v645_v1 = vadd.f32 %v644_v10, %v643_v12  ;;  %v670_v12 = vsel %vm469_vm2, %v1378_v47, 0.0 }
  0x6a   : > { %v548_v34 = vadd.f32 %v547_v41, %v546_v46  ;;  %v1358_v41 = vunpack.c.h.bf16 %v2073_v52  ;;  %v1362_v46 = vunpack.c.h.bf16 %v2080_v40  ;;  %v1370_v52 = vunpack.c.h.bf16 %v1433_v61 }
  0x6b   : > { %v647_v24 = vadd.f32 %v646_v16, %v645_v1 }
  0x6c   : > { %v550_v60 = vadd.f32 %v549_v35, %v548_v34  ;;  %v1436_v35 = vld [vmem:[%s1721_s13 + $0x190] sm:$0xff]   ;;  %v660_v34 = vsel %vm469_vm2, %v1358_v41, 0.0  ;;  %v662_v58 = vsel %vm469_vm2, %v1362_v46, 0.0  ;;  %v666_v5 = vsel %vm469_vm2, %v1370_v52, 0.0  ;;  %v696_v41 = vld [vmem:[%s2191_s3] sm:$0x3] }
  0x6d   : > { %v649_v11 = vadd.f32 %v648_v3, %v647_v24  ;;  %v1625_v52 = vmov 1966171168  }
  0x6e   : > { %v552_v2 = vadd.f32 %v551_v56, %v550_v60  ;;  %v1381_v56 = vunpack.c.l.bf16 %v1436_v35  ;;  %v1437_v60 = vld [vmem:[%s1721_s13 + $0x198] sm:$0xff]   ;;  %s242_s13 = scalar_lea.vmem [#allocation3], %s1136_s11 }
  0x6f   : > { %v651_v13 = vadd.f32 %v650_v9, %v649_v11  ;;  %v1386_v10 = vunpack.c.h.bf16 %v1437_v60  ;;  %v676_v9 = vld [vmem:[#allocation2] sm:$0x1]  ;;  %s1055_s14 = sshll.u32 %s242_s13, 4  ;;  %s1056_s14 = int_to_ptr.vmem [resolvable:$true] %s1055_s14 }
  0x70   : > { %v554_v53 = vadd.f32 %v553_v63, %v552_v2  ;;  %v1385_v2 = vunpack.c.l.bf16 %v1437_v60  ;;  %v569_v49 = vsel %vm469_vm2, %v1381_v56, 0.0  ;;  %v1021_v56 = vunpack.c.l.s4 %v1625_v52  ;;  %s1545_s25 = scalar_lea.vmem %s1056_s14, 32  ;;  %p1552_p1 = scmp.lt.s32.totalorder %s1056_s14, %s1550_s29 }
  0x71   : > { %v653_v31 = vadd.f32 %v652_v33, %v651_v13  ;;  %v674_v61 = vsel %vm469_vm2, %v1386_v10, 0.0  ;;  %v1539_v13 = vld [vmem:[%s2190_s2 + $0x94] ss:$8 sps:$4 sm:$0xff]   ;;  %p1546_p12 = scmp.ne.s32.totalorder %s1056_s14, %s1545_s25  ;;  %p1553_p2 = scmp.lt.s32.totalorder %s1551_s21, %s1545_s25 }
  0x72   : > { %v556_v15 = vadd.f32 %v555_v54, %v554_v53  ;;  %v1382_v54 = vunpack.c.h.bf16 %v1436_v35  ;;  %1004 = vmatprep.subr.bf16.mxu1 %v1539_v13 }
  0x73   : > { %v655_v38 = vadd.f32 %v654_v39, %v653_v31  ;;  %1005 = vmatpush2.bf16.msra.mxu1 %v1541_v36  ;;  %v707_v39 = vlaneseq  ;;  %p1547_p13 = pnand %p1546_p12, %p1697_p4  ;;  %p1554_p3 = por %p1553_p2, %p1552_p1 }
  0x74   : > { %v558_v6 = vadd.f32 %v557_v57, %v556_v15  ;;  %v571_v57 = vsel %vm469_vm2, %v1385_v2, 0.0  ;;  %v672_v59 = vsel %vm469_vm2, %v1382_v54, 0.0  ;;  %1006 = vmatprep.subr.bf16.mxu1 %v1542_v30 }
  0x75   : > { %v657_v50 = vadd.f32 %v656_v22, %v655_v38  ;;  %v708_v19 = vshrl.u32 %v707_v39, 7  ;;  %vm1037_vm3 = vcmp.lt.s32.totalorder %v707_v39, 256  ;;  %p1548_p0 = pneg %p1547_p13 }
  0x76   : > { %v560_v14 = vadd.f32 %v559_v18, %v558_v6 }
  0x77   : > { %v659_v37 = vadd.f32 %v658_v25, %v657_v50  ;;  %v709_v31 = vsub.s32 0, %v708_v19  ;;  %v713_v22 = vsub.s32 1, %v708_v19  ;;  %p1555_p5 = pnand %p1554_p3, %p1548_p0 }
  0x78   : > { %v562_v21 = vadd.f32 %v561_v26, %v560_v14 }
  0x79   : > { %v661_v40 = vadd.f32 %v660_v34, %v659_v37  ;;  %v714_v38 = vrot.slane %v696_v41, %v713_v22 }
  0x7a   : > { %v564_v44 = vadd.f32 %v563_v17, %v562_v21  ;;  %v1544_v17 = vld [vmem:[%s2190_s2 + $0x80] ss:$8 sps:$4 sm:$0xff]  }
  0x7b   : > { %v663_v0 = vadd.f32 %v662_v58, %v661_v40  ;;  %1007 = vmatpush2.bf16.msra.mxu1 %v1544_v17  ;;  %v1022_v40 = vunpack.c.0.s8 %v1021_v56 }
  0x7c   : > { %v566_v55 = vadd.f32 %v565_v48, %v564_v44  ;;  %v710_v44 = vrot.slane %v696_v41, %v709_v31 }
  0x7d   : > { %v665_v51 = vadd.f32 %v664_v45, %v663_v0  ;;  %v1025_v47 = vsub.s32 %v1022_v40, %v708_v19 }
  0x7e   : > { %v568_v63 = vadd.f32 %v567_v42, %v566_v55  ;;  %v804_v42 = vld [vmem:[%s2192_s4] sm:$0x3] }
  0x7f   : > { %v667_v53 = vadd.f32 %v666_v5, %v665_v51  ;;  %v969_v58 = vrot.slane %v804_v42, %v709_v31  ;;  %v973_v60 = vrot.slane %v804_v42, %v713_v22 }
  0x80   : > { %v570_v8 = vadd.f32 %v569_v49, %v568_v63 }
  0x81   : > { %v669_v62 = vadd.f32 %v668_v7, %v667_v53 }
  0x82   : > { %v572_v15 = vadd.f32 %v571_v57, %v570_v8 }
  0x83   : > { %v671_v16 = vadd.f32 %v670_v12, %v669_v62 }
  0x84   : > { %v677_v20 = vsel %vm469_vm2, %v572_v15, 0.0 }
  0x85   : > { %v673_v18 = vadd.f32 %v672_v59, %v671_v16 }
  0x87   : > { %v675_v1 = vadd.f32 %v674_v61, %v673_v18 }
  0x89   : > { %v678_v6 = vsel %vm469_vm2, %v675_v1, 0.0 }
  0x8a   : > { %v679_v3 = vadd.f32 %v678_v6, %v677_v20 }
  0x8c   : > { %v680_v23 = vrot.slane %v679_v3, 4 }
  0x8e   : > { %v681_v24 = vadd.f32 %v680_v23, %v679_v3 }
  0x90   : > { %v682_v4 = vrot.slane %v681_v24, 2 }
  0x92   : > { %v683_v14 = vadd.f32 %v682_v4, %v681_v24 }
  0x94   : > { %v684_v26 = vrot.slane %v683_v14, 1 }
  0x96   : > { %v685_v29 = vadd.f32 %v684_v26, %v683_v14 }
  0x98   : > { %v686_v11 = vadd.f32 %v685_v29, %v676_v9 }
  0x9a   : > { %688 = vst.msk [vmem:[#allocation2] sm:$0x1] %vm259_vm1, %v686_v11 }
  0xa1   : > { %v692_v27 = vld [vmem:[#allocation2] sm:$0x1] }
  0xa2   : > { %v693_v33 = vmul.f32 0.00390625, %v692_v27 }
  0xa4   : > { %v694_v21 = vpack.c.bf16 %v693_v33, %v693_v33 }
  0xa6   : > { %1140 = vmatmul.mubr.msk.bf16.vlgmr.msra.gmra.mxu0 %vm469_vm2, %v694_v21 }
 0x166   : > { %v761_v46 = vpop.f32.mrf.mxu0 }
 0x167   : > { %v762_v28 = vadd.f32 %v761_v46, %v710_v44 }
 0x168   : > { %v763_v48 = vpop.f32.mrf.mxu0 }
 0x169   : > { %v764_v25 = vadd.f32 %v763_v48, %v714_v38  ;;  %v768_v35 = vmax.f32 %v762_v28, 0.0 }
 0x16a   : > { %v765_v50 = vpop.f32.mrf.mxu0 }
 0x16b   : > { %v769_v32 = vmax.f32 %v764_v25, 0.0  ;;  %v770_v37 = vpack.c.bf16 %v768_v35, %v768_v35 }
 0x16c   : > { %v766_v34 = vpop.f32.mrf.mxu0 }
 0x16d   : > { %v771_v55 = vpack.c.bf16 %v769_v32, %v769_v32 }
 0x16f   : > { %1008 = vmatprep.mubr.bf16.mxu1 %v771_v55 }
 0x170   : > { %1009 = vmatmul.mubr.bf16.vlgmr.msra.gmra.mxu1 %v770_v37 }
 0x230   : > { %v1010_v43 = vpop.f32.mrf.mxu1 }
 0x231   : > { %v1011_v63 = vadd.f32 %v1010_v43, %v969_v58 }
 0x232   : > { %v1012_v45 = vpop.f32.mrf.mxu1 }
 0x233   : > { %v1013_v0 = vadd.f32 %v1012_v45, %v973_v60 }
 0x234   : > { %v1014_v2 = vpop.f32.mrf.mxu1 }
 0x235   : > { %v1019_v49 = vcombine.low %v1011_v63, %v1013_v0 }
 0x236   : > { %v1015_v5 = vpop.f32.mrf.mxu1 }
 0x237   : > { %v1026_v51 = vrot.slane %v1019_v49, %v1025_v47 }
 0x239   : > { %v1033_v54 = vrot.slane %v1026_v51, %v1025_v47 }
 0x23b   : > { %1039 = vst.msk [vmem:[%s242_s13] sm:$0x3] %vm1037_vm3, %v1033_v54 }
 0x23c   : > { %1558 = shalt.err (!%p1555_p5)
}
 0x23d   : > { %s1559_s7 = scalar_lea.hbm %s1053_s17, 32  ;;  %s1563_s10 = scalar_lea.hbm %s2193_s5, 64 }
 0x23e   : > { %p1560_p6 = scmp.ne.s32.totalorder %s1053_s17, %s1559_s7  ;;  %p1564_p10 = scmp.lt.s32.totalorder %s1053_s17, %s2193_s5 }
 0x23f   : > { %p1565_p11 = scmp.lt.s32.totalorder %s1563_s10, %s1559_s7 }
 0x240   : > { %p1561_p7 = pnand %p1560_p6, %p1697_p4 }
 0x241   : > { %p1566_p12 = por %p1565_p11, %p1564_p10 }
 0x242   : > { %p1562_p9 = pneg %p1561_p7 }
 0x244   : > { %p1567_p13 = pnand %p1566_p12, %p1562_p9 }
 0x246   : > { %1570 = shalt.err (!%p1567_p13)
}
 0x247   : > { %1439 = dma.vmem_to_hbm [thread:$0]  (%p1697_p4), %s1056_s14, 32, %s1053_s17, %s1041_s24  }
 0x248 PF: > { %p1445_p0 = scmp.ge.s32.totalorder %s1621_s23, 2  ;;  %s1067_s13 = sand.u32 1, %s1601_s18  }
 0x249   : > { %s1068_s15 = scalar_lea.sflag [#allocation4], %s1067_s13 }
 0x24a   : > { %p1442_p1 = pnand %p1445_p0, %p1704_p8 }
 0x24c   : > { %p1443_p2 = pneg %p1442_p1 }
 0x24e   : > { %1596 = dma.done.wait (%p1443_p2), %s1068_s15, 32  }
 0x24f   : > { %1598 = vsyncadd (%p1443_p2), %s1068_s15, 4294967264  ;;  %s18_s23 = sadd.s32 1, %s1621_s23   ;;  %s2196_s18 = smov %s1605_s19 }
 0x250   : > { %p15_p3 = scmp.ge.s32.totalorder %s18_s23, 4   ;;  %s2197_s19 = smov %s1609_s20 }
 0x251   : > { %s2198_s20 = smov %s1710_s6  ;;  %s2199_s21 = smov %s1617_s22 }
 0x252   : > { %s2200_s22 = smov %s2202_s26  ;;  %17 = sbr.rel (!%p15_p3) target bundleno = 4 (0x4), region = 83 }
 0x257   :  { %1073 = vsyncpa [#allocation4], 1 }
 0x258   :  { %1075 = vsyncpa [#allocation4 + $0x1], 1 }

</bundles_post_ra>
